<compile_context>
chip_gen: v7x
topology: tpu7x:2x2x1
jax: 0.10.0
libtpu: 0.0.40
codegen_flags: <defaults>
</compile_context>

<pallas_src>
import jax
import jax.numpy as jnp
from jax.experimental import pallas as pl
from jax.experimental.pallas import tpu as pltpu

LANE = 128                    # hardware lane width
WIDTHS = (1024, 512, 256, 128)  # candidate lane-dense slab widths
MAX_BLOCK_BYTES = 4 << 20     # ~4 MiB per buffer: near HBM roofline per step
MIN_BLOCK_BYTES = 512 << 10   # don't shrink blocks below ~512 KiB chasing steps
TARGET_GRID_STEPS = 4         # >=2 so v7x's two TensorCores both get work
VMEM_LIMIT_BYTES = 32 << 20   # 2x headroom over 4 bufs x 4 MiB; fits v5e..v7x


def linreg_kernel(x_ref, w_ref, b_ref, o_ref):
    # y = x @ W^T + b with W:(1,1)  ->  elementwise x * w00 + b0 on the VPU.
    w = w_ref[0, 0]   # scalar reads from SMEM (scalar path, no vreg cost)
    b = b_ref[0, 0]
    o_ref[...] = (x_ref[...] * w + b).astype(o_ref.dtype)


def _round_up(x, m):
    return ((x + m - 1) // m) * m


def _pick_block_rows(rows, width, itemsize):
    """Aim for ~TARGET_GRID_STEPS grid steps, 512 KiB..4 MiB per buffer,
    never exceeding the array (a block equal to the full row extent is legal
    even when it is not a multiple of 8)."""
    bytes_per_row = width * itemsize
    max_rows = max(8, (MAX_BLOCK_BYTES // bytes_per_row) // 8 * 8)
    min_rows = max(8, (MIN_BLOCK_BYTES // bytes_per_row) // 8 * 8)
    cand = _round_up(pl.cdiv(rows, TARGET_GRID_STEPS), 8)
    cand = max(min_rows, min(max_rows, cand))
    return min(cand, rows)


def linear_regression_forward(x, weight, bias):
    """x: (N, 1), weight: (1, 1), bias: (1,)  ->  (N, 1);  y = x @ W^T + b."""
    orig_shape = x.shape
    n = x.size                      # in_features == 1, so total elements == N
    flat = x.reshape(-1)            # free metadata-only reshape

    # Lane-dense slab (rows, width): free reshape when 128 | n.  Only when N
    # is not a multiple of 128 do we pad (one small extra copy).
    # TODO(synk): for large awkward N, allow_input_fusion could fuse this pad
    # into the pallas_call input stream instead of materializing it.
    width = next((w for w in WIDTHS if n % w == 0), 0)
    padded_n = n
    if width == 0:
        width = LANE
        padded_n = _round_up(n, width)
        flat = jnp.pad(flat, (0, padded_n - n))
    rows = padded_n // width
    slab = flat.reshape(rows, width)

    block_rows = _pick_block_rows(rows, width, slab.dtype.itemsize)
    grid = (pl.cdiv(rows, block_rows),)   # partial trailing block is masked

    out = pl.pallas_call(
        linreg_kernel,
        out_shape=jax.ShapeDtypeStruct((rows, width), x.dtype),
        grid=grid,
        in_specs=[
            # Lane-dense tile, auto double-buffered across the row grid.
            pl.BlockSpec((block_rows, width), lambda i: (i, 0)),
            # Scalars live in SMEM: no VMEM DMA, no cross-lane extract.
            pl.BlockSpec(memory_space=pltpu.MemorySpace.SMEM),
            pl.BlockSpec(memory_space=pltpu.MemorySpace.SMEM),
        ],
        out_specs=pl.BlockSpec((block_rows, width), lambda i: (i, 0)),
        compiler_params=pltpu.CompilerParams(
            dimension_semantics=("parallel",),
            vmem_limit_bytes=VMEM_LIMIT_BYTES,
        ),
        cost_estimate=pl.CostEstimate(
            flops=2 * slab.size,
            bytes_accessed=2 * slab.size * slab.dtype.itemsize,
            transcendentals=0,
        ),
    )(slab,
      weight.astype(jnp.float32).reshape(1, 1),
      bias.astype(jnp.float32).reshape(1, 1))

    out_flat = out.reshape(-1)
    if padded_n != n:
        out_flat = out_flat[:n]      # only on the (rare) pad path
    return out_flat.reshape(orig_shape)


if __name__ == "__main__":
    key = jax.random.PRNGKey(0)
    kw, kb, kx = jax.random.split(key, 3)

    # Deterministic parameters with the same shapes as nn.Linear(1, 1).
    weight = jax.random.uniform(kw, (1, 1), jnp.float32, minval=-1.0, maxval=1.0)
    bias = jax.random.uniform(kb, (1,), jnp.float32, minval=-1.0, maxval=1.0)

    # Primary small case consistent with the module: batch=8, in_features=1.
    x = jax.random.normal(kx, (8, 1), jnp.float32)
    y = jax.block_until_ready(linear_regression_forward(x, weight, bias))
    y_ref = x @ weight.T + bias
    assert y.shape == (8, 1)
    assert jnp.allclose(y, y_ref, atol=1e-6), "mismatch vs reference (N=8)"

    # Also exercise the zero-copy (no pad / no slice) fast paths:
    #   N=1024 -> width 1024 slab, N=2176 -> width 128 slab with 17 rows.
    for n in (1024, 2176):
        xs = jax.random.normal(jax.random.fold_in(kx, n), (n, 1), jnp.float32)
        ys = jax.block_until_ready(linear_regression_forward(xs, weight, bias))
        assert jnp.allclose(ys, xs @ weight.T + bias, atol=1e-6), f"mismatch N={n}"

    print("KERNEL_OK")
</pallas_src>

<mosaic_0001>
module attributes {stable_mosaic.version = 11 : i64} {
  func.func @linreg_kernel(%arg0: i32, %arg1: memref<1x128xf32, #tpu.memory_space<vmem>>, %arg2: memref<1x1xf32, #tpu.memory_space<smem>>, %arg3: memref<1x1xf32, #tpu.memory_space<smem>>, %arg4: memref<1x128xf32, #tpu.memory_space<vmem>>) attributes {dimension_semantics = [#tpu.dimension_semantics<parallel>], iteration_bounds = array<i64: 1>, scalar_prefetch = 0 : i64, scratch_operands = 0 : i64, tpu.core_type = #tpu.core_type<tc>, window_params = [{transform_indices = @transform_0, window_bounds = array<i64: 1, 128>}, {transform_indices = @transform_1, window_bounds = array<i64: 1, 1>}, {transform_indices = @transform_2, window_bounds = array<i64: 1, 1>}, {transform_indices = @transform_3, window_bounds = array<i64: 1, 128>}]} {
    %c0 = arith.constant 0 : index
    %c0_0 = arith.constant 0 : index
    %0 = memref.load %arg2[%c0, %c0_0] : memref<1x1xf32, #tpu.memory_space<smem>>
    %c0_1 = arith.constant 0 : index
    %c0_2 = arith.constant 0 : index
    %1 = memref.load %arg3[%c0_1, %c0_2] : memref<1x1xf32, #tpu.memory_space<smem>>
    %c0_3 = arith.constant 0 : index
    %c0_4 = arith.constant 0 : index
    %2 = vector.load %arg1[%c0_3, %c0_4] : memref<1x128xf32, #tpu.memory_space<vmem>>, vector<1x128xf32>
    %3 = vector.broadcast %0 : f32 to vector<1x128xf32>
    %4 = arith.mulf %2, %3 : vector<1x128xf32>
    %5 = vector.broadcast %1 : f32 to vector<1x128xf32>
    %6 = arith.addf %4, %5 : vector<1x128xf32>
    %c0_5 = arith.constant 0 : index
    %c0_6 = arith.constant 0 : index
    %7 = vector.load %arg4[%c0_5, %c0_6] : memref<1x128xf32, #tpu.memory_space<vmem>>, vector<1x128xf32>
    tpu.vector_store %arg4[%c0_5, %c0_6], %6 {strides = array<i32>} : memref<1x128xf32, #tpu.memory_space<vmem>>, vector<1x128xf32>,
    return
  }
  func.func @transform_0(%arg0: i32) -> (i32, i32) {
    %c0_i32 = arith.constant 0 : i32
    %c0_i32_0 = arith.constant 0 : i32
    return %arg0, %c0_i32 : i32, i32
  }
  func.func @transform_1(%arg0: i32) -> (i32, i32) {
    %c0_i32 = arith.constant 0 : i32
    %c0_i32_0 = arith.constant 0 : i32
    %c0_i32_1 = arith.constant 0 : i32
    return %c0_i32, %c0_i32_0 : i32, i32
  }
  func.func @transform_2(%arg0: i32) -> (i32, i32) {
    %c0_i32 = arith.constant 0 : i32
    %c0_i32_0 = arith.constant 0 : i32
    %c0_i32_1 = arith.constant 0 : i32
    return %c0_i32, %c0_i32_0 : i32, i32
  }
  func.func @transform_3(%arg0: i32) -> (i32, i32) {
    %c0_i32 = arith.constant 0 : i32
    %c0_i32_0 = arith.constant 0 : i32
    return %arg0, %c0_i32 : i32, i32
  }
}

</mosaic_0001>

<bundles_post_ra>
// kernel: tpu_custom_call.1
= control target key start
LH: loop header
LB: loop body
LE: loop exit
PB: predicated region body
PF: predicated region fallthrough
CT: control target
= control target key end

     0   :  { %s106_s0 = inlined_call_operand.vmem [shape: f32[1,128], index: 0, kind: input, shape index: {}]   ;;  %s107_s1 = inlined_call_operand.<no memory space> [shape: f32[1,1], index: 1, kind: input, shape index: {}]   ;;  %s108_s2 = inlined_call_operand.<no memory space> [shape: f32[1,1], index: 2, kind: input, shape index: {}]   ;;  %s109_s3 = inlined_call_operand.hbm [shape: f32[1,128], index: 3, kind: output, shape index: {}]  }
   0x1   :  { %v19_v0 = vld [vmem:[%s106_s0] sm:$0x1]  ;;  %v20_v1 = vstv %s107_s1  ;;  %v22_v2 = vstv %s108_s2 }
   0x2   :  { %10 = vsyncpa [#allocation5], 0  ;;  %v21_v3 = vmul.f32 %v20_v1, %v19_v0  ;;  %s64_s18 = smov [#allocation4]  }
   0x3   :  { %s31_s19 = sshll.u32 %s64_s18, 4  ;;  %s32_s19 = int_to_ptr.vmem [resolvable:$true] %s31_s19 }
   0x4   :  { %v23_v4 = vadd.f32 %v22_v2, %v21_v3  ;;  %s40_s20 = scalar_lea.vmem %s32_s19, 16  ;;  %s44_s21 = scalar_lea.vmem %s32_s19, 32 }
   0x5   :  { %p41_p0 = scmp.ne.s32.totalorder %s32_s19, %s40_s20  ;;  %p45_p1 = scmp.lt.s32.totalorder %s32_s19, %s32_s19 }
   0x6   :  { %24 = vst [vmem:[#allocation4] sm:$0x1] %v23_v4  ;;  %p46_p2 = scmp.lt.s32.totalorder %s44_s21, %s40_s20 }
   0x8   :  { %p47_p3 = por %p46_p2, %p45_p1 }
   0xa   :  { %p48_p4 = pnand %p47_p3, %p41_p0 }
   0xc   :  { %51 = shalt.err (!%p48_p4)
}
   0xd   :  { %s52_s22 = scalar_lea.hbm %s109_s3, 16 }
   0xe   :  { %p53_p5 = scmp.ne.s32.totalorder %s109_s3, %s52_s22  ;;  %p56_p6 = scmp.lt.u32.totalorder %s52_s22, %s109_s3 }
  0x10   :  { %p58_p7 = pnand %p56_p6, %p53_p5 }
  0x12   :  { %61 = shalt.err (!%p58_p7)
}
  0x13   :  { %34 = dma.vmem_to_hbm [thread:$0]  %s32_s19, 16, %s109_s3, [#allocation5]  }
  0x14   :  { %62 = dma.done.wait [#allocation5], 16  }
  0x15   :  { %63 = vsyncadd [#allocation5], 4294967280 }
  0x16   :  { %38 = vsyncpa [#allocation5], 1 }

</bundles_post_ra>
